<compile_context>
chip_gen: v7x
topology: tpu7x:2x2x1
jax: 0.10.0
libtpu: 0.0.40
codegen_flags: <defaults>
</compile_context>

<pallas_src>
import functools

import jax
import jax.numpy as jnp
from jax.experimental import pallas as pl
from jax.experimental.pallas import tpu as pltpu

MAP_FEATS = 1161                        # batch[..., :-3]
COORD_FEATS = 3
TOTAL_FEATS = MAP_FEATS + COORD_FEATS   # 1164
ENC_DIM = 16                            # Linear(1, 16) heads
CONCAT_FEATS = MAP_FEATS + 4 * ENC_DIM  # 1225
H1, H2 = 128, 32                        # linear_after_mean hidden sizes


def _autoencoder_path_kernel(
    batch_ref,    # (TB, 1164) bf16 or f32: full row (map+footprint, x, y, theta)
    w_small_ref,  # (4, 16)    f32   rows: x_cord, y_cord, theta_sin, theta_cos
    b_small_ref,  # (4, 16)    f32   matching biases
    w1b_ref,      # (1164,128) bf16  W1[:1161] (transposed) + 3 zero coord rows
    w1e_ref,      # (64, 128)  bf16  W1[1161:] (transposed)
    b1_ref,       # (1, 128)   f32
    w2_ref,       # (128, 32)  f32
    b2_ref,       # (1, 32)    f32
    w3t_ref,      # (1, 32)    f32   Linear(32,1) weight, pre-transposed
    b3_ref,       # (1, 1)     f32
    out_ref,      # (TB, 1)    f32
):
    # Coordinates live in the last 3 lanes of the row tile; an in-kernel lane
    # slice (XLU work with huge slack) replaces the old separate coords stream.
    coords = batch_ref[:, MAP_FEATS:].astype(jnp.float32)   # (TB, 3)
    x_crd = coords[:, 0:1]
    y_crd = coords[:, 1:2]
    theta = coords[:, 2:3]

    # Linear(1, 16) + ReLU heads: input dim 1 -> broadcasted outer products on
    # the VPU (f32; sin/cos use the EUP slot for free).
    w_s = w_small_ref[...]
    b_s = b_small_ref[...]
    x_enc = jnp.maximum(x_crd * w_s[0:1, :] + b_s[0:1, :], 0.0)
    y_enc = jnp.maximum(y_crd * w_s[1:2, :] + b_s[1:2, :], 0.0)
    s_enc = jnp.maximum(jnp.sin(theta) * w_s[2:3, :] + b_s[2:3, :], 0.0)
    c_enc = jnp.maximum(jnp.cos(theta) * w_s[3:4, :] + b_s[3:4, :], 0.0)
    enc = jnp.concatenate([x_enc, y_enc, s_enc, c_enc], axis=1)  # (TB, 64) f32

    # torch.cat((map, x, y, sin, cos), 1) @ W1
    #   == row(1164) @ W1_padded (coord rows are zero) + enc @ W1[1161:]
    # Both matmuls run bf16 x bf16 on the MXU with f32 accumulation.  The
    # row cast is a no-op when the caller already streams bf16.
    row_bf = batch_ref[...].astype(jnp.bfloat16)
    h1 = (
        jnp.dot(row_bf, w1b_ref[...], preferred_element_type=jnp.float32)
        + jnp.dot(enc.astype(jnp.bfloat16), w1e_ref[...],
                  preferred_element_type=jnp.float32)
        + b1_ref[...]
    )
    h1 = jnp.maximum(h1, 0.0)

    h2 = jnp.maximum(
        jnp.dot(h1, w2_ref[...], preferred_element_type=jnp.float32) + b2_ref[...],
        0.0,
    )

    # Linear(32, 1): lane reduction on VPU/XLU instead of a 1-lane MXU pass.
    logits = jnp.sum(h2 * w3t_ref[...], axis=-1, keepdims=True) + b3_ref[...]
    out_ref[...] = jax.nn.sigmoid(logits)


def init_params(key):
    """Deterministic, PyTorch-Linear-style uniform(+-1/sqrt(fan_in)) init.

    Master params are float32, weights stored as (in_features, out_features)."""
    ks = jax.random.split(key, 14)

    def lin(kw, kb, fan_in, fan_out):
        bound = 1.0 / jnp.sqrt(jnp.float32(fan_in))
        w = jax.random.uniform(kw, (fan_in, fan_out), jnp.float32, -bound, bound)
        b = jax.random.uniform(kb, (1, fan_out), jnp.float32, -bound, bound)
        return w, b

    w_small_rows, b_small_rows = [], []
    for i in range(4):  # x_cord, y_cord, theta_sin, theta_cos
        w, b = lin(ks[2 * i], ks[2 * i + 1], 1, ENC_DIM)
        w_small_rows.append(w)
        b_small_rows.append(b)
    w_small = jnp.concatenate(w_small_rows, axis=0)  # (4, 16)
    b_small = jnp.concatenate(b_small_rows, axis=0)  # (4, 16)

    w1, b1 = lin(ks[8], ks[9], CONCAT_FEATS, H1)     # (1225, 128)
    w2, b2 = lin(ks[10], ks[11], H1, H2)             # (128, 32)
    w3, b3 = lin(ks[12], ks[13], H2, 1)              # (32, 1)

    return {"w_small": w_small, "b_small": b_small, "w1": w1, "b1": b1,
            "w2": w2, "b2": b2, "w3": w3, "b3": b3}


def pack_params(params):
    """Prepare kernel operands: split/zero-pad W1, bf16-cast MXU weights."""
    w1 = params["w1"]                                # (1225, 128) f32
    w1_batch = jnp.concatenate(
        [w1[:MAP_FEATS], jnp.zeros((COORD_FEATS, H1), jnp.float32)], axis=0
    ).astype(jnp.bfloat16)                           # (1164, 128), coord rows = 0
    return {
        "w_small": params["w_small"],
        "b_small": params["b_small"],
        "w1_batch": w1_batch,
        "w1_enc": w1[MAP_FEATS:].astype(jnp.bfloat16),  # (64, 128) bf16 (MXU)
        "b1": params["b1"],
        "w2": params["w2"],
        "b2": params["b2"],
        "w3t": params["w3"].T,                       # (1, 32)
        "b3": params["b3"],
    }


def _round_up(x, m):
    return ((x + m - 1) // m) * m


def _pick_tile(batch_rows, block_rows):
    """Batch tile: multiple of 8, capped at block_rows, and (when possible)
    yielding >= 2 grid steps so both v7x TensorCores get work."""
    if batch_rows <= 8:
        return batch_rows          # single block; block == full extent is legal
    return max(8, min(block_rows, _round_up(-(-batch_rows // 2), 8)))


@functools.partial(jax.jit, static_argnames=("block_rows",))
def autoencoder_path_forward(batch, packed, block_rows=2048):
    """Pallas implementation of Autoencoder_path.forward.

    `batch` may be bf16 (preferred, halves HBM traffic) or f32; either way it
    streams straight into the kernel with no wrapper-side cast / pad / slice
    passes.  `block_rows` caps the batch tile (2048 keeps double-buffered f32
    tiles ~22 MB, under the 32 MiB VMEM request on all generations)."""
    assert block_rows >= 8 and block_rows % 8 == 0
    batch = batch.reshape(-1, TOTAL_FEATS)
    if batch.dtype not in (jnp.bfloat16, jnp.float32):
        batch = batch.astype(jnp.float32)
    B = batch.shape[0]

    tb = _pick_tile(B, block_rows)
    n_blocks = pl.cdiv(B, tb)   # trailing partial block: padded reads, masked writes

    row_map = lambda i: (i, 0)
    const_map = lambda i: (0, 0)
    in_specs = [
        pl.BlockSpec((tb, TOTAL_FEATS), row_map),     # batch rows, pipelined
        pl.BlockSpec((4, ENC_DIM), const_map),        # VMEM-resident weights below
        pl.BlockSpec((4, ENC_DIM), const_map),
        pl.BlockSpec((TOTAL_FEATS, H1), const_map),
        pl.BlockSpec((4 * ENC_DIM, H1), const_map),
        pl.BlockSpec((1, H1), const_map),
        pl.BlockSpec((H1, H2), const_map),
        pl.BlockSpec((1, H2), const_map),
        pl.BlockSpec((1, H2), const_map),
        pl.BlockSpec((1, 1), const_map),
    ]
    out_spec = pl.BlockSpec((tb, 1), row_map)

    itemsize = jnp.dtype(batch.dtype).itemsize
    flops = 2 * B * (TOTAL_FEATS * H1 + 4 * ENC_DIM * H1 + H1 * H2 + H2)
    weight_bytes = (
        (TOTAL_FEATS * H1 + 4 * ENC_DIM * H1) * 2     # bf16 MXU weights
        + (H1 + H1 * H2 + H2 + H2 + 1 + 8 * ENC_DIM) * 4
    )
    bytes_accessed = B * (TOTAL_FEATS * itemsize + 4) + weight_bytes
    cost = pl.CostEstimate(flops=flops, transcendentals=3 * B,
                           bytes_accessed=bytes_accessed)

    return pl.pallas_call(
        _autoencoder_path_kernel,
        out_shape=jax.ShapeDtypeStruct((B, 1), jnp.float32),
        grid_spec=pltpu.PrefetchScalarGridSpec(
            num_scalar_prefetch=0,
            grid=(n_blocks,),
            in_specs=in_specs,
            out_specs=out_spec,
        ),
        compiler_params=pltpu.CompilerParams(
            dimension_semantics=("parallel",),        # megacore-shard batch axis
            vmem_limit_bytes=32 * 1024 * 1024,
        ),
        cost_estimate=cost,
    )(
        batch,
        packed["w_small"], packed["b_small"],
        packed["w1_batch"], packed["w1_enc"], packed["b1"],
        packed["w2"], packed["b2"],
        packed["w3t"], packed["b3"],
    )


def reference_forward(batch, params):
    """Pure-JAX f32 reference matching the PyTorch forward semantics."""
    batch = batch.reshape(-1, TOTAL_FEATS).astype(jnp.float32)
    map_part = batch[:, :MAP_FEATS]
    x = batch[:, MAP_FEATS:MAP_FEATS + 1]
    y = batch[:, MAP_FEATS + 1:MAP_FEATS + 2]
    th = batch[:, MAP_FEATS + 2:]
    relu = jax.nn.relu
    x_enc = relu(x * params["w_small"][0:1] + params["b_small"][0:1])
    y_enc = relu(y * params["w_small"][1:2] + params["b_small"][1:2])
    s_enc = relu(jnp.sin(th) * params["w_small"][2:3] + params["b_small"][2:3])
    c_enc = relu(jnp.cos(th) * params["w_small"][3:4] + params["b_small"][3:4])
    full = jnp.concatenate([map_part, x_enc, y_enc, s_enc, c_enc], axis=1)
    h1 = relu(full @ params["w1"] + params["b1"])
    h2 = relu(h1 @ params["w2"] + params["b2"])
    return jax.nn.sigmoid(h2 @ params["w3"] + params["b3"])


def reference_forward_quantized(batch, packed):
    """Reference replicating the kernel's exact numeric path (bf16 MXU ops)."""
    b = batch.reshape(-1, TOTAL_FEATS)
    coords = b[:, MAP_FEATS:].astype(jnp.float32)
    x, y, th = coords[:, 0:1], coords[:, 1:2], coords[:, 2:3]
    relu = jax.nn.relu
    ws, bs = packed["w_small"], packed["b_small"]
    x_enc = relu(x * ws[0:1] + bs[0:1])
    y_enc = relu(y * ws[1:2] + bs[1:2])
    s_enc = relu(jnp.sin(th) * ws[2:3] + bs[2:3])
    c_enc = relu(jnp.cos(th) * ws[3:4] + bs[3:4])
    enc = jnp.concatenate([x_enc, y_enc, s_enc, c_enc], axis=1)
    row_bf = b.astype(jnp.bfloat16).astype(jnp.float32)
    h1 = relu(row_bf @ packed["w1_batch"].astype(jnp.float32)
              + enc.astype(jnp.bfloat16).astype(jnp.float32)
                @ packed["w1_enc"].astype(jnp.float32)
              + packed["b1"])
    h2 = relu(h1 @ packed["w2"] + packed["b2"])
    logits = jnp.sum(h2 * packed["w3t"], axis=-1, keepdims=True) + packed["b3"]
    return jax.nn.sigmoid(logits)


if __name__ == "__main__":
    key = jax.random.PRNGKey(0)
    k_params, k_b1, k_b2, k_b3 = jax.random.split(key, 4)
    params = init_params(k_params)
    packed = pack_params(params)

    # --- small single-block bf16 check (B = 8) ---
    batch8 = jax.random.uniform(
        k_b1, (8, TOTAL_FEATS), jnp.float32, 0.0, 1.0).astype(jnp.bfloat16)
    out8 = jax.block_until_ready(autoencoder_path_forward(batch8, packed))
    assert out8.shape == (8, 1)
    assert jnp.allclose(out8, reference_forward_quantized(batch8, packed),
                        atol=2e-3, rtol=0.0)
    assert jnp.allclose(out8, reference_forward(batch8.astype(jnp.float32), params),
                        atol=2e-2, rtol=0.0)

    # --- multi-block grid + unpadded partial trailing block (B = 300, TB = 128) ---
    batch300 = jax.random.uniform(
        k_b2, (300, TOTAL_FEATS), jnp.float32, 0.0, 1.0).astype(jnp.bfloat16)
    out300 = jax.block_until_ready(
        autoencoder_path_forward(batch300, packed, block_rows=128))
    assert out300.shape == (300, 1)
    assert jnp.allclose(out300, reference_forward_quantized(batch300, packed),
                        atol=2e-3, rtol=0.0)

    # --- f32 rows streamed directly (in-register bf16 cast), odd B ->
    #     2-step grid (v7x megacore path) with a masked partial block ---
    batch37 = jax.random.uniform(k_b3, (37, TOTAL_FEATS), jnp.float32, 0.0, 1.0)
    out37 = jax.block_until_ready(autoencoder_path_forward(batch37, packed))
    assert out37.shape == (37, 1)
    assert jnp.allclose(out37, reference_forward_quantized(batch37, packed),
                        atol=2e-3, rtol=0.0)

    print("KERNEL_OK")
</pallas_src>

<mosaic_0001>
module attributes {stable_mosaic.version = 11 : i64} {
  func.func @_autoencoder_path_kernel(%arg0: i32, %arg1: memref<8x1164xbf16, #tpu.memory_space<vmem>>, %arg2: memref<4x16xf32, #tpu.memory_space<vmem>>, %arg3: memref<4x16xf32, #tpu.memory_space<vmem>>, %arg4: memref<1164x128xbf16, #tpu.memory_space<vmem>>, %arg5: memref<64x128xbf16, #tpu.memory_space<vmem>>, %arg6: memref<1x128xf32, #tpu.memory_space<vmem>>, %arg7: memref<128x32xf32, #tpu.memory_space<vmem>>, %arg8: memref<1x32xf32, #tpu.memory_space<vmem>>, %arg9: memref<1x32xf32, #tpu.memory_space<vmem>>, %arg10: memref<1x1xf32, #tpu.memory_space<vmem>>, %arg11: memref<8x1xf32, #tpu.memory_space<vmem>>) attributes {dimension_semantics = [#tpu.dimension_semantics<parallel>], iteration_bounds = array<i64: 1>, scalar_prefetch = 0 : i64, scratch_operands = 0 : i64, tpu.core_type = #tpu.core_type<tc>, window_params = [{transform_indices = @transform_0, window_bounds = array<i64: 8, 1164>}, {pipeline_mode = #tpu.pipeline_mode<synchronous>, transform_indices = @transform_1, window_bounds = array<i64: 4, 16>}, {pipeline_mode = #tpu.pipeline_mode<synchronous>, transform_indices = @transform_2, window_bounds = array<i64: 4, 16>}, {pipeline_mode = #tpu.pipeline_mode<synchronous>, transform_indices = @transform_3, window_bounds = array<i64: 1164, 128>}, {pipeline_mode = #tpu.pipeline_mode<synchronous>, transform_indices = @transform_4, window_bounds = array<i64: 64, 128>}, {pipeline_mode = #tpu.pipeline_mode<synchronous>, transform_indices = @transform_5, window_bounds = array<i64: 1, 128>}, {pipeline_mode = #tpu.pipeline_mode<synchronous>, transform_indices = @transform_6, window_bounds = array<i64: 128, 32>}, {pipeline_mode = #tpu.pipeline_mode<synchronous>, transform_indices = @transform_7, window_bounds = array<i64: 1, 32>}, {pipeline_mode = #tpu.pipeline_mode<synchronous>, transform_indices = @transform_8, window_bounds = array<i64: 1, 32>}, {pipeline_mode = #tpu.pipeline_mode<synchronous>, transform_indices = @transform_9, window_bounds = array<i64: 1, 1>}, {transform_indices = @transform_10, window_bounds = array<i64: 8, 1>}]} {
    %c0 = arith.constant 0 : index
    %c1161 = arith.constant 1161 : index
    %0 = vector.load %arg1[%c0, %c1161] : memref<8x1164xbf16, #tpu.memory_space<vmem>>, vector<8x3xbf16>
    %1 = arith.extf %0 : vector<8x3xbf16> to vector<8x3xf32>
    %2 = vector.extract_strided_slice %1 {offsets = [0, 0], sizes = [8, 1], strides = [1, 1]} : vector<8x3xf32> to vector<8x1xf32>
    %3 = vector.extract_strided_slice %1 {offsets = [0, 1], sizes = [8, 1], strides = [1, 1]} : vector<8x3xf32> to vector<8x1xf32>
    %4 = vector.extract_strided_slice %1 {offsets = [0, 2], sizes = [8, 1], strides = [1, 1]} : vector<8x3xf32> to vector<8x1xf32>
    %c0_0 = arith.constant 0 : index
    %c0_1 = arith.constant 0 : index
    %5 = vector.load %arg2[%c0_0, %c0_1] : memref<4x16xf32, #tpu.memory_space<vmem>>, vector<4x16xf32>
    %c0_2 = arith.constant 0 : index
    %c0_3 = arith.constant 0 : index
    %6 = vector.load %arg3[%c0_2, %c0_3] : memref<4x16xf32, #tpu.memory_space<vmem>>, vector<4x16xf32>
    %7 = vector.extract_strided_slice %5 {offsets = [0, 0], sizes = [1, 16], strides = [1, 1]} : vector<4x16xf32> to vector<1x16xf32>
    %8 = vector.broadcast %2 : vector<8x1xf32> to vector<8x16xf32>
    %9 = vector.broadcast %7 : vector<1x16xf32> to vector<8x16xf32>
    %10 = arith.mulf %8, %9 : vector<8x16xf32>
    %11 = vector.extract_strided_slice %6 {offsets = [0, 0], sizes = [1, 16], strides = [1, 1]} : vector<4x16xf32> to vector<1x16xf32>
    %12 = vector.broadcast %11 : vector<1x16xf32> to vector<8x16xf32>
    %13 = arith.addf %10, %12 : vector<8x16xf32>
    %cst = arith.constant 0.000000e+00 : f32
    %14 = vector.broadcast %cst : f32 to vector<8x16xf32>
    %15 = arith.maximumf %13, %14 : vector<8x16xf32>
    %16 = vector.extract_strided_slice %5 {offsets = [1, 0], sizes = [1, 16], strides = [1, 1]} : vector<4x16xf32> to vector<1x16xf32>
    %17 = vector.broadcast %3 : vector<8x1xf32> to vector<8x16xf32>
    %18 = vector.broadcast %16 : vector<1x16xf32> to vector<8x16xf32>
    %19 = arith.mulf %17, %18 : vector<8x16xf32>
    %20 = vector.extract_strided_slice %6 {offsets = [1, 0], sizes = [1, 16], strides = [1, 1]} : vector<4x16xf32> to vector<1x16xf32>
    %21 = vector.broadcast %20 : vector<1x16xf32> to vector<8x16xf32>
    %22 = arith.addf %19, %21 : vector<8x16xf32>
    %cst_4 = arith.constant 0.000000e+00 : f32
    %23 = vector.broadcast %cst_4 : f32 to vector<8x16xf32>
    %24 = arith.maximumf %22, %23 : vector<8x16xf32>
    %25 = math.sin %4 : vector<8x1xf32>
    %26 = vector.extract_strided_slice %5 {offsets = [2, 0], sizes = [1, 16], strides = [1, 1]} : vector<4x16xf32> to vector<1x16xf32>
    %27 = vector.broadcast %25 : vector<8x1xf32> to vector<8x16xf32>
    %28 = vector.broadcast %26 : vector<1x16xf32> to vector<8x16xf32>
    %29 = arith.mulf %27, %28 : vector<8x16xf32>
    %30 = vector.extract_strided_slice %6 {offsets = [2, 0], sizes = [1, 16], strides = [1, 1]} : vector<4x16xf32> to vector<1x16xf32>
    %31 = vector.broadcast %30 : vector<1x16xf32> to vector<8x16xf32>
    %32 = arith.addf %29, %31 : vector<8x16xf32>
    %cst_5 = arith.constant 0.000000e+00 : f32
    %33 = vector.broadcast %cst_5 : f32 to vector<8x16xf32>
    %34 = arith.maximumf %32, %33 : vector<8x16xf32>
    %35 = math.cos %4 : vector<8x1xf32>
    %36 = vector.extract_strided_slice %5 {offsets = [3, 0], sizes = [1, 16], strides = [1, 1]} : vector<4x16xf32> to vector<1x16xf32>
    %37 = vector.broadcast %35 : vector<8x1xf32> to vector<8x16xf32>
    %38 = vector.broadcast %36 : vector<1x16xf32> to vector<8x16xf32>
    %39 = arith.mulf %37, %38 : vector<8x16xf32>
    %40 = vector.extract_strided_slice %6 {offsets = [3, 0], sizes = [1, 16], strides = [1, 1]} : vector<4x16xf32> to vector<1x16xf32>
    %41 = vector.broadcast %40 : vector<1x16xf32> to vector<8x16xf32>
    %42 = arith.addf %39, %41 : vector<8x16xf32>
    %cst_6 = arith.constant 0.000000e+00 : f32
    %43 = vector.broadcast %cst_6 : f32 to vector<8x16xf32>
    %44 = arith.maximumf %42, %43 : vector<8x16xf32>
    %45 = tpu.concatenate %15, %24, %34, %44 in 1 : vector<8x16xf32>, vector<8x16xf32>, vector<8x16xf32>, vector<8x16xf32> -> vector<8x64xf32>
    %c0_7 = arith.constant 0 : index
    %c0_8 = arith.constant 0 : index
    %46 = vector.load %arg1[%c0_7, %c0_8] : memref<8x1164xbf16, #tpu.memory_space<vmem>>, vector<8x1164xbf16>
    %c0_9 = arith.constant 0 : index
    %c0_10 = arith.constant 0 : index
    %47 = vector.load %arg4[%c0_9, %c0_10] : memref<1164x128xbf16, #tpu.memory_space<vmem>>, vector<1164x128xbf16>
    %cst_11 = arith.constant dense<0.000000e+00> : vector<8x128xf32>
    %48 = tpu.matmul %46, %47, %cst_11 {dimension_numbers = #tpu.dot_dimension_numbers<[1], [0], [0], [1], [0, 0, 1, 1], [], []>} : vector<8x1164xbf16>, vector<1164x128xbf16>, vector<8x128xf32> -> vector<8x128xf32>
    %49 = arith.truncf %45 : vector<8x64xf32> to vector<8x64xbf16>
    %c0_12 = arith.constant 0 : index
    %c0_13 = arith.constant 0 : index
    %50 = vector.load %arg5[%c0_12, %c0_13] : memref<64x128xbf16, #tpu.memory_space<vmem>>, vector<64x128xbf16>
    %cst_14 = arith.constant dense<0.000000e+00> : vector<8x128xf32>
    %51 = tpu.matmul %49, %50, %cst_14 {dimension_numbers = #tpu.dot_dimension_numbers<[1], [0], [0], [1], [0, 0, 1, 1], [], []>} : vector<8x64xbf16>, vector<64x128xbf16>, vector<8x128xf32> -> vector<8x128xf32>
    %52 = arith.addf %48, %51 : vector<8x128xf32>
    %c0_15 = arith.constant 0 : index
    %c0_16 = arith.constant 0 : index
    %53 = vector.load %arg6[%c0_15, %c0_16] : memref<1x128xf32, #tpu.memory_space<vmem>>, vector<1x128xf32>
    %54 = vector.broadcast %53 : vector<1x128xf32> to vector<8x128xf32>
    %55 = arith.addf %52, %54 : vector<8x128xf32>
    %cst_17 = arith.constant 0.000000e+00 : f32
    %56 = vector.broadcast %cst_17 : f32 to vector<8x128xf32>
    %57 = arith.maximumf %55, %56 : vector<8x128xf32>
    %c0_18 = arith.constant 0 : index
    %c0_19 = arith.constant 0 : index
    %58 = vector.load %arg7[%c0_18, %c0_19] : memref<128x32xf32, #tpu.memory_space<vmem>>, vector<128x32xf32>
    %cst_20 = arith.constant dense<0.000000e+00> : vector<8x32xf32>
    %59 = tpu.matmul %57, %58, %cst_20 {dimension_numbers = #tpu.dot_dimension_numbers<[1], [0], [0], [1], [0, 0, 1, 1], [], []>} : vector<8x128xf32>, vector<128x32xf32>, vector<8x32xf32> -> vector<8x32xf32>
    %c0_21 = arith.constant 0 : index
    %c0_22 = arith.constant 0 : index
    %60 = vector.load %arg8[%c0_21, %c0_22] : memref<1x32xf32, #tpu.memory_space<vmem>>, vector<1x32xf32>
    %61 = vector.broadcast %60 : vector<1x32xf32> to vector<8x32xf32>
    %62 = arith.addf %59, %61 : vector<8x32xf32>
    %cst_23 = arith.constant 0.000000e+00 : f32
    %63 = vector.broadcast %cst_23 : f32 to vector<8x32xf32>
    %64 = arith.maximumf %62, %63 : vector<8x32xf32>
    %c0_24 = arith.constant 0 : index
    %c0_25 = arith.constant 0 : index
    %65 = vector.load %arg9[%c0_24, %c0_25] : memref<1x32xf32, #tpu.memory_space<vmem>>, vector<1x32xf32>
    %66 = vector.broadcast %65 : vector<1x32xf32> to vector<8x32xf32>
    %67 = arith.mulf %64, %66 : vector<8x32xf32>
    %cst_26 = arith.constant dense<0.000000e+00> : vector<8xf32>
    %68 = vector.multi_reduction <add>, %67, %cst_26 [1] : vector<8x32xf32> to vector<8xf32>
    %69 = vector.shape_cast %68 : vector<8xf32> to vector<8x1xf32>
    %c0_27 = arith.constant 0 : index
    %c0_28 = arith.constant 0 : index
    %70 = vector.load %arg10[%c0_27, %c0_28] : memref<1x1xf32, #tpu.memory_space<vmem>>, vector<1x1xf32>
    %71 = vector.broadcast %70 : vector<1x1xf32> to vector<8x1xf32>
    %72 = arith.addf %69, %71 : vector<8x1xf32>
    %73 = arith.negf %72 : vector<8x1xf32>
    %74 = math.exp %73 : vector<8x1xf32>
    %cst_29 = arith.constant 1.000000e+00 : f32
    %75 = vector.broadcast %cst_29 : f32 to vector<8x1xf32>
    %76 = arith.addf %75, %74 : vector<8x1xf32>
    %77 = arith.divf %75, %76 : vector<8x1xf32>
    %c0_30 = arith.constant 0 : index
    %c0_31 = arith.constant 0 : index
    %78 = vector.load %arg11[%c0_30, %c0_31] : memref<8x1xf32, #tpu.memory_space<vmem>>, vector<8x1xf32>
    tpu.vector_store %arg11[%c0_30, %c0_31], %77 {strides = array<i32>} : memref<8x1xf32, #tpu.memory_space<vmem>>, vector<8x1xf32>,
    return
  }
  func.func @transform_0(%arg0: i32) -> (i32, i32) {
    %c0_i32 = arith.constant 0 : i32
    %c0_i32_0 = arith.constant 0 : i32
    return %arg0, %c0_i32 : i32, i32
  }
  func.func @transform_1(%arg0: i32) -> (i32, i32) {
    %c0_i32 = arith.constant 0 : i32
    %c0_i32_0 = arith.constant 0 : i32
    %c0_i32_1 = arith.constant 0 : i32
    return %c0_i32, %c0_i32_0 : i32, i32
  }
  func.func @transform_2(%arg0: i32) -> (i32, i32) {
    %c0_i32 = arith.constant 0 : i32
    %c0_i32_0 = arith.constant 0 : i32
    %c0_i32_1 = arith.constant 0 : i32
    return %c0_i32, %c0_i32_0 : i32, i32
  }
  func.func @transform_3(%arg0: i32) -> (i32, i32) {
    %c0_i32 = arith.constant 0 : i32
    %c0_i32_0 = arith.constant 0 : i32
    %c0_i32_1 = arith.constant 0 : i32
    return %c0_i32, %c0_i32_0 : i32, i32
  }
  func.func @transform_4(%arg0: i32) -> (i32, i32) {
    %c0_i32 = arith.constant 0 : i32
    %c0_i32_0 = arith.constant 0 : i32
    %c0_i32_1 = arith.constant 0 : i32
    return %c0_i32, %c0_i32_0 : i32, i32
  }
  func.func @transform_5(%arg0: i32) -> (i32, i32) {
    %c0_i32 = arith.constant 0 : i32
    %c0_i32_0 = arith.constant 0 : i32
    %c0_i32_1 = arith.constant 0 : i32
    return %c0_i32, %c0_i32_0 : i32, i32
  }
  func.func @transform_6(%arg0: i32) -> (i32, i32) {
    %c0_i32 = arith.constant 0 : i32
    %c0_i32_0 = arith.constant 0 : i32
    %c0_i32_1 = arith.constant 0 : i32
    return %c0_i32, %c0_i32_0 : i32, i32
  }
  func.func @transform_7(%arg0: i32) -> (i32, i32) {
    %c0_i32 = arith.constant 0 : i32
    %c0_i32_0 = arith.constant 0 : i32
    %c0_i32_1 = arith.constant 0 : i32
    return %c0_i32, %c0_i32_0 : i32, i32
  }
  func.func @transform_8(%arg0: i32) -> (i32, i32) {
    %c0_i32 = arith.constant 0 : i32
    %c0_i32_0 = arith.constant 0 : i32
    %c0_i32_1 = arith.constant 0 : i32
    return %c0_i32, %c0_i32_0 : i32, i32
  }
  func.func @transform_9(%arg0: i32) -> (i32, i32) {
    %c0_i32 = arith.constant 0 : i32
    %c0_i32_0 = arith.constant 0 : i32
    %c0_i32_1 = arith.constant 0 : i32
    return %c0_i32, %c0_i32_0 : i32, i32
  }
  func.func @transform_10(%arg0: i32) -> (i32, i32) {
    %c0_i32 = arith.constant 0 : i32
    %c0_i32_0 = arith.constant 0 : i32
    return %arg0, %c0_i32 : i32, i32
  }
}

</mosaic_0001>

<bundles_post_ra>
// kernel: autoencoder_path_forward.1
= control target key start
LH: loop header
LB: loop body
LE: loop exit
PB: predicated region body
PF: predicated region fallthrough
CT: control target
= control target key end

     0   :  { %s2057_s0 = inlined_call_operand.vmem [shape: bf16[8,1164], index: 0, kind: input, shape index: {}]   ;;  %s2058_s1 = inlined_call_operand.vmem [shape: f32[4,16], index: 1, kind: input, shape index: {}]   ;;  %s2059_s2 = inlined_call_operand.vmem [shape: f32[4,16], index: 2, kind: input, shape index: {}]   ;;  %s2060_s3 = inlined_call_operand.hbm [shape: bf16[1164,128], index: 3, kind: input, shape index: {}]   ;;  %s2061_s4 = inlined_call_operand.vmem [shape: bf16[64,128], index: 4, kind: input, shape index: {}]   ;;  %s2062_s5 = inlined_call_operand.vmem [shape: f32[1,128], index: 5, kind: input, shape index: {}]   ;;  %s2063_s6 = inlined_call_operand.vmem [shape: f32[128,32], index: 6, kind: input, shape index: {}]   ;;  %s2064_s7 = inlined_call_operand.vmem [shape: f32[1,32], index: 7, kind: input, shape index: {}]   ;;  %s2065_s8 = inlined_call_operand.vmem [shape: f32[1,32], index: 8, kind: input, shape index: {}]   ;;  %s2066_s9 = inlined_call_operand.<no memory space> [shape: f32[1,1], index: 9, kind: input, shape index: {}]   ;;  %s2067_s10 = inlined_call_operand.vmem [shape: f32[8,1], index: 10, kind: output, shape index: {}]  }
   0x1   :  { %v15_v0 = vstv %s2066_s9 }
   0x2   :  { %16 = vst [vmem:[#allocation2] sm:$0x1] %v15_v0 }
   0x3   :  { %17 = vsyncpa [#allocation4], 0  ;;  %s1815_s15 = smov [#allocation3]   ;;  %s1791_s19 = scalar_lea.hbm %s2060_s3, 9344 }
   0x4   :  { %s29_s16 = sshll.u32 %s1815_s15, 4  ;;  %p1792_p0 = scmp.ne.s32.totalorder %s2060_s3, %s1791_s19  ;;  %s30_s16 = int_to_ptr.vmem [resolvable:$true] %s29_s16 }
   0x5   :  { %p1795_p1 = scmp.lt.u32.totalorder %s1791_s19, %s2060_s3 }
   0x7   :  { %p1797_p2 = pnand %p1795_p1, %p1792_p0 }
   0x9   :  { %1800 = shalt.err (!%p1797_p2)
}
   0xa   :  { %s1801_s9 = scalar_lea.vmem %s30_s16, 9344  ;;  %p1806_p4 = scmp.lt.s32.totalorder %s30_s16, %s30_s16 }
   0xb   :  { %p1802_p3 = scmp.ne.s32.totalorder %s30_s16, %s1801_s9  ;;  %p1807_p5 = scmp.lt.s32.totalorder %s1801_s9, %s1801_s9 }
   0xd   :  { %p1808_p6 = por %p1807_p5, %p1806_p4 }
   0xf   :  { %p1809_p7 = pnand %p1808_p6, %p1802_p3 }
  0x11   :  { %1812 = shalt.err (!%p1809_p7)
}
  0x12   :  { %s1816_s24 = smov 64   ;;  %s1817_s25 = smov 4  }
  0x13   :  { %35 = dma.hbm_to_vmem [thread:$0]  %s2060_s3, 9344, %s30_s16, [#allocation4], %s1816_s24, %s1816_s24, %s1817_s25  }
  0x14   :  { %1813 = dma.done.wait [#allocation4], 9344  }
  0x15   :  { %1814 = vsyncadd [#allocation4], 4294957952  ;;  %v1818_v1 = vmov 10   ;;  %v1819_v2 = vmov 11   ;;  %v52_v3 = vld [vmem:[%s2057_s0 + $0x24] sm:$0xf] }
  0x16   :  { %1692 = vset.pattern.permute.xlu0 %v1818_v1  ;;  %1694 = vset.pattern.permute.xlu1 %v1819_v2  ;;  %v1907_v4 = vunpack.c.l.bf16 %v52_v3  ;;  %v1820_v17 = vmov 683565275   ;;  %v1821_v19 = vmov 2475754826   ;;  %v1822_v21 = vmov 2131351028  }
  0x17   :  { %v1823_v23 = vmov 2102212464   ;;  %v1824_v25 = vmov 920167782   ;;  %v1825_v32 = vmov 1326507024  }
  0x18   :  { %73 = vperm.xlu0 %1692, %v1907_v4   ;;  %v87_v5 = vand.u32 2147483647, %v1907_v4  ;;  %v90_v6 = vand.u32 2139095040, %v1907_v4  ;;  %vm89_vm7 = vcmp.lt.s32.totalorder %v1907_v4, 0  ;;  %vm179_vm15 = vweird.f32 %v1907_v4  ;;  %s1831_s22 = smov 48  }
  0x1a   :  { %v91_v7 = vshrl.u32 %v90_v6, 23  ;;  %v94_v8 = vand.u32 8388607, %v87_v5  ;;  %vm88_vm8 = vcmp.le.f32.partialorder %v87_v5, 0.7853982 }
  0x1c   :  { %1693 = vset.pattern.permute.xlu0 %v1819_v2  ;;  %v1386_v9 = vadd.s32 4294967169, %v91_v7  ;;  %v95_v10 = vor.u32 8388608, %v94_v8 }
  0x1e   :  { %v97_v11 = vadd.s32 1, %v1386_v9  ;;  %v135_v13 = vshll.u32 %v95_v10, 8 }
  0x20   :  { %vm98_vm0 = vcmp.gt.s32.totalorder %v97_v11, 0 }
  0x21   :  { %v99_v12 = vsel %vm98_vm0, %v97_v11, 0  ;;  %vm1829_vm0 = vmmov 0  }
  0x22   :  { %v100_v14 = vshrl.u32 %v99_v12, 5  ;;  %v101_v15 = vand.u32 31, %v99_v12 }
  0x24   :  { %v102_v16 = vsub.s32 32, %v101_v15  ;;  %v104_v18 = vshll.u32 %v1820_v17, %v101_v15  ;;  %v107_v20 = vshll.u32 %v1821_v19, %v101_v15  ;;  %v110_v22 = vshll.u32 %v1822_v21, %v101_v15 }
  0x25   :  { %v113_v24 = vshll.u32 %v1823_v23, %v101_v15  ;;  %v116_v26 = vshll.u32 %v1824_v25, %v101_v15  ;;  %vm119_vm1 = vcmp.lt.s32.totalorder %v100_v14, 1  ;;  %vm120_vm2 = vcmp.lt.s32.totalorder %v100_v14, 2 }
  0x26   :  { %v103_v27 = vshrl.u32 %v1820_v17, %v102_v16  ;;  %v105_v28 = vshrl.u32 %v1821_v19, %v102_v16  ;;  %v108_v29 = vshrl.u32 %v1822_v21, %v102_v16  ;;  %v111_v30 = vshrl.u32 %v1823_v23, %v102_v16 }
  0x27   :  { %v114_v31 = vshrl.u32 %v1824_v25, %v102_v16  ;;  %v117_v33 = vshrl.u32 %v1825_v32, %v102_v16  ;;  %vm121_vm3 = vcmp.lt.s32.totalorder %v100_v14, 3  ;;  %vm122_vm4 = vcmp.lt.s32.totalorder %v100_v14, 4 }
  0x28   :  { %v106_v34 = vor.u32 %v105_v28, %v104_v18  ;;  %v109_v35 = vor.u32 %v108_v29, %v107_v20  ;;  %v112_v36 = vor.u32 %v111_v30, %v110_v22 }
  0x29   :  { %v115_v37 = vor.u32 %v114_v31, %v113_v24  ;;  %v118_v38 = vor.u32 %v117_v33, %v116_v26 }
  0x2a   :  { %v123_v39 = vsel %vm119_vm1, %v103_v27, %v106_v34  ;;  %v124_v40 = vsel %vm122_vm4, %v112_v36, 2102212464  ;;  %v127_v41 = vsel %vm119_vm1, %v106_v34, %v109_v35  ;;  %v131_v42 = vsel %vm119_vm1, %v109_v35, %v112_v36 }
  0x2b   :  { %v125_v43 = vsel %vm121_vm3, %v109_v35, %v124_v40  ;;  %v128_v44 = vsel %vm122_vm4, %v115_v37, 920167782  ;;  %v132_v45 = vsel %vm122_vm4, %v118_v38, 1326507024  ;;  %v1826_v38 = vmov 9   ;;  %v1697_v40 = vld [vmem:[#allocation3] sm:$0xff]  }
  0x2c   :  { %v129_v46 = vsel %vm121_vm3, %v112_v36, %v128_v44  ;;  %v133_v47 = vsel %vm121_vm3, %v115_v37, %v132_v45  ;;  %v126_v48 = vsel %vm120_vm2, %v123_v39, %v125_v43  ;;  %v1696_v39 = vld [vmem:[#allocation3 + $0x40] sm:$0xff]   ;;  %v1699_v43 = vld [vmem:[#allocation3 + $0x8] sm:$0xff]   ;;  %v1700_v45 = vld [vmem:[#allocation3 + $0x50] sm:$0xff]   ;;  %vm1047_vm1 = vcmask 1045504  }
  0x2d   :  { %v130_v49 = vsel %vm120_vm2, %v127_v41, %v129_v46  ;;  %v134_v50 = vsel %vm120_vm2, %v131_v42, %v133_v47  ;;  %v142_v55 = vmul.u32 %v135_v13, %v126_v48  ;;  %v1698_v41 = vld [vmem:[#allocation3 + $0x48] sm:$0xff]   ;;  %v1827_v42 = vmov 0.0   ;;  %1493 = vmatprep.subr.bf16.mxu1 %v1696_v39  ;;  %v1706_v44 = vld [vmem:[%s2061_s4] sm:$0xff]   ;;  %v1701_v46 = vld [vmem:[#allocation3 + $0x10] sm:$0xff]  }
  0x2e   :  { %v1920_v51 = vmul.u32.u64.low %v135_v13, %v134_v50  ;;  %v1921_v52 = vmul.u32.u64.high %v135_v13, %v134_v50, %v1920_v51  ;;  %v1923_v53 = vmul.u32.u64.low %v135_v13, %v130_v49  ;;  %v1924_v54 = vmul.u32.u64.high %v135_v13, %v130_v49, %v1923_v53  ;;  %1598 = vmatprep.subr.bf16.mxu0 %v1827_v42  ;;  %1494 = vmatpush3.bf16.msra.mxu1 %v1697_v40  ;;  %v1702_v47 = vld [vmem:[#allocation3 + $0x58] sm:$0xff]   ;;  %v1704_v49 = vld [vmem:[#allocation3 + $0x60] sm:$0xff]  }
  0x2f   :  { %1495 = vmatprep.subr.bf16.mxu1 %v1698_v41  ;;  %1599 = vmatpush3.bf16.msra.mxu0 %v1706_v44  ;;  %v1703_v48 = vld [vmem:[#allocation3 + $0x18] sm:$0xff]   ;;  %v1705_v50 = vld [vmem:[#allocation3 + $0x20] sm:$0xff]   ;;  %v1707_v51 = vld [vmem:[#allocation3 + $0x68] sm:$0xff]   ;;  %vm1043_vm2 = vcmask 97280   ;;  %vm338_vm3 = vcmask 130048   ;;  %vm340_vm4 = vcmask 261120  }
  0x30   :  { %vm144_vm5 = vc.u32 %v1921_v52, %v1923_v53  ;;  %v145_v56 = vadd.s32 1, %v1924_v54  ;;  %v143_v3 = vadd.s32 %v1923_v53, %v1921_v52  ;;  %1600 = vmatprep.subr.bf16.mxu0 %v1827_v42  ;;  %v1708_v52 = vld [vmem:[#allocation3 + $0x28] sm:$0xff]   ;;  %v1710_v53 = vld [vmem:[#allocation3 + $0x70] sm:$0xff]   ;;  %1606 = vmatprep.mubr.msk.bf16.mxu0 %vm1829_vm0, %v1827_v42  ;;  %v1746_v39 = vld [vmem:[#allocation3 + $0x178] sm:$0xff]  }
  0x31   :  { %v1747_v40 = vld [vmem:[#allocation3 + $0x138] sm:$0xff]   ;;  %v346_v41 = vld [vmem:[%s2057_s0 + $0x10] sm:$0xff] }
  0x32   :  { %v146_v57 = vsel %vm144_vm5, %v145_v56, %v1924_v54  ;;  %1496 = vmatpush3.bf16.msra.mxu1 %v1699_v43  ;;  %v1711_v54 = vld [vmem:[#allocation3 + $0x30] sm:$0xff]   ;;  %v1404_v43 = vcombine.high %v346_v41, %v346_v41  ;;  %v1403_v44 = vcombine.low %v346_v41, %v346_v41  ;;  %vm342_vm5 = vcmask 392192  }
  0x33   :  { %v147_v58 = vadd.s32 %v146_v57, %v142_v55  ;;  %1497 = vmatprep.subr.bf16.mxu1 %v1700_v45  ;;  %v61_v55 = vlaneseq  ;;  %v1950_v57 = vld [vmem:[%s2058_s1] sm:$0xf]  ;;  %s1828_s1 = smov 16   ;;  %v1773_v41 = vld [vmem:[#allocation3 + $0x1f0] sm:$0xff]  }
  0x34   :  { %v1754_v45 = vld [vmem:[#allocation3 + $0x200] sm:$0xff]  }
  0x35   :  { %v148_v59 = vadd.s32 536870912, %v147_v58  ;;  %v1945_v56 = vshrl.u32 %v61_v55, 7  ;;  %v348_v55 = vld [vmem:[%s2057_s0 + $0x20] sm:$0xff] }
  0x36   :  { %1498 = vmatpush3.bf16.msra.mxu1 %v1701_v46  ;;  %v1757_v46 = vld [vmem:[#allocation3 + $0x208] sm:$0xff]  }
  0x37   :  { %v149_v60 = vshrl.u32 %v148_v59, 30  ;;  %1499 = vmatprep.subr.bf16.mxu1 %v1702_v47  ;;  %v1712_v59 = vld [vmem:[%s2061_s4 + $0x10] sm:$0xff]  }
  0x38   :  { %v1760_v47 = vld [vmem:[#allocation3 + $0x210] sm:$0xff]  }
  0x39   :  { %v150_v61 = vshll.u32 %v149_v60, 30  ;;  %v173_v14 = vsub.s32 4, %v149_v60 }
  0x3a   :  { %1500 = vmatpush3.bf16.msra.mxu1 %v1703_v48  ;;  %v1763_v48 = vld [vmem:[#allocation3 + $0x218] sm:$0xff]  }
  0x3b   :  { %v151_v62 = vsub.s32 %v147_v58, %v150_v61  ;;  %v174_v20 = vsel %vm89_vm7, %v173_v14, %v149_v60  ;;  %1501 = vmatprep.subr.bf16.mxu1 %v1704_v49  ;;  %v78_v58 = vsub.s32 1, %v1945_v56  ;;  %v1713_v60 = vld [vmem:[#allocation3 + $0x78] sm:$0xff]   ;;  %v1719_v14 = vld [vmem:[#allocation3 + $0x100] sm:$0xff]  }
  0x3c   :  { %v176_v23 = vsel %vm88_vm8, 0, %v174_v20  ;;  %v1714_v61 = vld [vmem:[#allocation3 + $0x38] sm:$0xff]   ;;  %v1766_v49 = vld [vmem:[#allocation3 + $0x220] sm:$0xff]  }
  0x3d   :  { %v153_v63 = vsub.s32 0, %v151_v62  ;;  %v180_v24 = vadd.s32 3, %v176_v23  ;;  %v300_v26 = vand.u32 3, %v176_v23 }
  0x3e   :  { %1502 = vmatpush3.bf16.msra.mxu1 %v1705_v50  ;;  %v1769_v50 = vld [vmem:[#allocation3 + $0x228] sm:$0xff]  }
  0x3f   :  { %v1387_v0 = vmin.u32 %v153_v63, %v151_v62  ;;  %v181_v25 = vand.u32 3, %v180_v24  ;;  %vm305_vm10 = vcmp.eq.s32.totalorder %v300_v26, 2  ;;  %vm302_vm12 = vcmp.eq.s32.totalorder %v300_v26, 0  ;;  %1503 = vmatprep.subr.bf16.mxu1 %v1707_v51  ;;  %v1772_v51 = vld [vmem:[#allocation3 + $0x230] sm:$0xff]  }
  0x40   :  { %vm301_vm14 = vcmp.lt.s32.totalorder %v300_v26, 2  ;;  %v79_v63 = vrot.slane %v1950_v57, %v78_v58  ;;  %v1726_v26 = vld [vmem:[#allocation3 + $0x150] sm:$0xff]  }
  0x41   :  { %v155_v1 = vclz %v1387_v0  ;;  %vm186_vm9 = vcmp.eq.s32.totalorder %v181_v25, 2  ;;  %vm183_vm11 = vcmp.eq.s32.totalorder %v181_v25, 0  ;;  %vm182_vm13 = vcmp.lt.s32.totalorder %v181_v25, 2 }
  0x42   :  { %1504 = vmatpush3.bf16.msra.mxu1 %v1708_v52  ;;  %v1775_v52 = vld [vmem:[#allocation3 + $0x238] sm:$0xff]  }
  0x43   :  { %v1388_v2 = vadd.s32 4294967294, %v155_v1  ;;  %1505 = vmatprep.subr.bf16.mxu1 %v1710_v53  ;;  %v1780_v53 = vld [vmem:[#allocation3 + $0x240] sm:$0x3f]  }
  0x45   :  { %vm1389_vm6 = vcmp.lt.s32.totalorder %v1388_v2, 0 }
  0x46   :  { %v158_v6 = vsel %vm1389_vm6, 0, %v1388_v2  ;;  %1506 = vmatpush3.bf16.msra.mxu1 %v1711_v54  ;;  %v1049_v54 = vsel %vm1047_vm1, %v1780_v53, 0  ;;  %vm528_vm6 = vcmask 523264  }
  0x47   :  { %v159_v7 = vsub.s32 32, %v158_v6  ;;  %v160_v8 = vshll.u32 %v151_v62, %v158_v6  ;;  %v163_v9 = vsub.s32 4294967266, %v158_v6  ;;  %v1959_v62 = vld [vmem:[%s2059_s2] sm:$0xf]  ;;  %1507 = vmatprep.subr.bf16.mxu1 %v1713_v60  ;;  %v63_v60 = vsub.s32 0, %v1945_v56 }
  0x48   :  { %v84_v0 = vrot.slane %v1959_v62, %v78_v58  ;;  %v1408_v58 = vcombine.high %v348_v55, %v348_v55 }
  0x49   :  { %v161_v10 = vshrl.u32 %v143_v3, %v159_v7  ;;  %v164_v11 = vadd.s32 127, %v163_v9  ;;  %v344_v7 = vld [vmem:[%s2057_s0] sm:$0xff] }
  0x4a   :  { %1508 = vmatpush3.bf16.msra.mxu1 %v1714_v61  ;;  %v1400_v9 = vcombine.high %v344_v7, %v344_v7  ;;  %v64_v61 = vrot.slane %v1950_v57, %v63_v60 }
  0x4b   :  { %v162_v12 = vor.u32 %v161_v10, %v160_v8  ;;  %v165_v13 = vshll.u32 %v164_v11, 23  ;;  %v1715_v8 = vld [vmem:[%s2061_s4 + $0x18] sm:$0xff]   ;;  %v198_v10 = vsub.s32 2, %v1945_v56  ;;  %v317_v11 = vsub.s32 3, %v1945_v56 }
  0x4c   :  { %1083 = vmatprep.mubr.bf16.mxu1 %v1400_v9 }
  0x4d   :  { %v166_v15 = vor.u32 4788187, %v165_v13  ;;  %v169_v16 = vcvt.s32.f32 %v162_v12  ;;  %v1399_v12 = vcombine.low %v344_v7, %v344_v7  ;;  %v1718_v13 = vld [vmem:[#allocation3 + $0x140] sm:$0xff]   ;;  %v323_v20 = vrot.slane %v1959_v62, %v317_v11 }
  0x4e   :  { %1537 = vmatprep.subr.bf16.mxu1 %v1718_v13  ;;  %v345_v7 = vld [vmem:[%s2057_s0 + $0x8] sm:$0xff] }
  0x4f   :  { %v167_v17 = vand.u32 2147483647, %v166_v15  ;;  %1084 = vmatmul.mubr.bf16.vlgmr.msra.gmra.mrb[0].mxu1 %v1399_v12  ;;  %v1720_v15 = vld [vmem:[#allocation3 + $0xc0] sm:$0xff]   ;;  %v1724_v13 = vld [vmem:[#allocation3 + $0xc8] sm:$0xff]  }
  0x50   :  { %1538 = vmatpush3.bf16.msra.mxu1 %v1719_v14  ;;  %1163 = vmatprep.mubr.bf16.mxu1 %v1404_v43  ;;  %v1725_v14 = vld [vmem:[#allocation3 + $0x88] sm:$0xff]   ;;  %v1774_v43 = vld [vmem:[#allocation3 + $0x1b0] sm:$0xff]  }
  0x51   :  { %v170_v18 = vmul.f32 %v169_v16, %v167_v17  ;;  %v199_v16 = vrot.slane %v1950_v57, %v198_v10  ;;  %v318_v17 = vrot.slane %v1950_v57, %v317_v11  ;;  %v1721_v11 = vld [vmem:[#allocation3 + $0x80] sm:$0xff]  }
  0x53   :  { %v171_v19 = vxor.u32 2147483648, %v170_v18 }
  0x55   :  { %v172_v21 = vsel %vm89_vm7, %v171_v19, %v170_v18  ;;  %v1722_v18 = vld [vmem:[#allocation3 + $0x148] sm:$0xff]   ;;  %v204_v19 = vrot.slane %v1959_v62, %v198_v10  ;;  %vm1379_vm7 = vcmask 7168  }
  0x56   :  { %v175_v22 = vsel %vm88_vm8, %v1907_v4, %v172_v21  ;;  %v1723_v21 = vld [vmem:[#allocation3 + $0x108] sm:$0xff]   ;;  %1539 = vmatprep.subr.bf16.mxu1 %v1722_v18  ;;  %v1733_v18 = vld [vmem:[#allocation3 + $0x98] sm:$0xff]  }
  0x57   :  { %1783 = vcosq.f32 %v175_v22  ;;  %1540 = vmatpush3.bf16.msra.mxu1 %v1723_v21  ;;  %v1740_v21 = vld [vmem:[#allocation3 + $0xe8] sm:$0xff]  }
  0x58   :  { %1785 = vsinq.f32 %v175_v22  ;;  %1541 = vmatprep.subr.bf16.mxu1 %v1726_v26  ;;  %v1749_v26 = vld [vmem:[#allocation3 + $0xb8] sm:$0xff]  }
  0x61   :  { %v1784_v27 = vpop.eup %1783 }
  0x62   :  { %v1786_v5 = vpop.eup %1785  ;;  %v187_v28 = vxor.u32 2147483648, %v1784_v27 }
  0x63   :  { %v184_v29 = vxor.u32 2147483648, %v1786_v5 }
  0x64   :  { %v188_v30 = vsel %vm186_vm9, %v187_v28, %v1786_v5  ;;  %v307_v31 = vsel %vm305_vm10, %v187_v28, %v1786_v5  ;;  %v1727_v28 = vld [vmem:[#allocation3 + $0x110] sm:$0xff]  }
  0x65   :  { %v185_v32 = vsel %vm183_vm11, %v1784_v27, %v184_v29  ;;  %v304_v33 = vsel %vm302_vm12, %v1784_v27, %v184_v29  ;;  %1542 = vmatpush3.bf16.msra.mxu1 %v1727_v28  ;;  %v1401_v28 = vcombine.low %v345_v7, %v345_v7 }
  0x66   :  { %v189_v34 = vsel %vm182_vm13, %v185_v32, %v188_v30  ;;  %v308_v35 = vsel %vm301_vm14, %v304_v33, %v307_v31  ;;  %v1730_v31 = vld [vmem:[#allocation3 + $0x158] sm:$0xff]   ;;  %v1734_v33 = vld [vmem:[#allocation3 + $0x160] sm:$0xff]  }
  0x67   :  { %v190_v36 = vsel %vm179_vm15, nan, %v189_v34  ;;  %v309_v37 = vsel %vm179_vm15, nan, %v308_v35  ;;  %v1731_v32 = vld [vmem:[#allocation3 + $0x118] sm:$0xff]   ;;  %1543 = vmatprep.subr.bf16.mxu1 %v1730_v31  ;;  %v1735_v34 = vld [vmem:[#allocation3 + $0x120] sm:$0xff]   ;;  %v1738_v35 = vld [vmem:[#allocation3 + $0x168] sm:$0xff]  }
  0x68   :  { %193 = vperm.xlu0 %1693, %v190_v36   ;;  %312 = vperm.xlu1 %1694, %v309_v37   ;;  %v1739_v36 = vld [vmem:[#allocation3 + $0x128] sm:$0xff]   ;;  %v1742_v37 = vld [vmem:[#allocation3 + $0x170] sm:$0xff]  }
  0x69   :  { %1544 = vmatpush3.bf16.msra.mxu1 %v1731_v32  ;;  %v1758_v31 = vld [vmem:[#allocation3 + $0x1c8] sm:$0xff]  }
  0x6a   :  { %1545 = vmatprep.subr.bf16.mxu1 %v1734_v33  ;;  %v1759_v32 = vld [vmem:[#allocation3 + $0x188] sm:$0xff]   ;;  %v1761_v33 = vld [vmem:[#allocation3 + $0x1d0] sm:$0xff]  }
  0x6c   :  { %1695 = vset.pattern.permute.xlu1 %v1826_v38  ;;  %v1743_v38 = vld [vmem:[#allocation3 + $0x130] sm:$0xff]  }
  0x6d   :  { %58 = vperm.xlu1 %1695, %v1907_v4   ;;  %v1709_v4 = vld [vmem:[%s2061_s4 + $0x8] sm:$0xff]   ;;  %s1830_s4 = smov 32   ;;  %1546 = vmatpush3.bf16.msra.mxu1 %v1735_v34  ;;  %v1762_v34 = vld [vmem:[#allocation3 + $0x190] sm:$0xff]  }
  0x6e   :  { %1601 = vmatpush3.bf16.msra.mxu0 %v1709_v4  ;;  %1547 = vmatprep.subr.bf16.mxu1 %v1738_v35  ;;  %v1832_v4 = vmov 0   ;;  %v1764_v35 = vld [vmem:[#allocation3 + $0x1d8] sm:$0xff]  }
  0x6f   :  { %1602 = vmatprep.subr.bf16.mxu0 %v1827_v42 }
  0x71   :  { %1548 = vmatpush3.bf16.msra.mxu1 %v1739_v36  ;;  %v1765_v36 = vld [vmem:[#allocation3 + $0x198] sm:$0xff]  }
  0x72   :  { %1603 = vmatpush3.bf16.msra.mxu0 %v1712_v59  ;;  %1549 = vmatprep.subr.bf16.mxu1 %v1742_v37  ;;  %v1407_v59 = vcombine.low %v348_v55, %v348_v55  ;;  %v1767_v37 = vld [vmem:[#allocation3 + $0x1e0] sm:$0xff]  }
  0x73   :  { %1604 = vmatprep.subr.bf16.mxu0 %v1827_v42 }
  0x75   :  { %1550 = vmatpush3.bf16.msra.mxu1 %v1743_v38  ;;  %v1768_v38 = vld [vmem:[#allocation3 + $0x1a0] sm:$0xff]  }
  0x76   :  { %1605 = vmatpush3.bf16.msra.mxu0 %v1715_v8  ;;  %1551 = vmatprep.subr.bf16.mxu1 %v1746_v39  ;;  %v1770_v39 = vld [vmem:[#allocation3 + $0x1e8] sm:$0xff]  }
  0x77   :  { %1515 = vmatprep.subr.bf16.mxu0 %v1720_v15  ;;  %v1728_v15 = vld [vmem:[#allocation3 + $0xd0] sm:$0xff]  }
  0x79   :  { %1552 = vmatpush3.bf16.msra.mxu1 %v1747_v40  ;;  %v1771_v40 = vld [vmem:[#allocation3 + $0x1a8] sm:$0xff]  }
  0x7a   :  { %1211 = vmatprep.subr.bf16.mxu1 %v1832_v4 }
  0x7c   :  { %1164 = vmatmul.mubr.bf16.vlgmr.msra.gmra.mrb[4].mxu1 %v1403_v44  ;;  %v1776_v44 = vld [vmem:[#allocation3 + $0x1f8] sm:$0xff]  }
  0x7d   :  { %1212 = vmatpush1.bf16.msra.mxu1 %v1754_v45  ;;  %1482 = vmatprep.mubr.msk.bf16.mxu1 %vm1043_vm2, %v1408_v58  ;;  %v1777_v45 = vld [vmem:[#allocation3 + $0x1b8] sm:$0xff]  }
  0x7e   :  { %1213 = vmatprep.subr.bf16.mxu1 %v1832_v4  ;;  %v1260_v58 = vld [vmem:[%s2063_s6] sm:$0xff] }
  0x81   :  { %1214 = vmatpush1.bf16.msra.mxu1 %v1757_v46 }
  0x82   :  { %1215 = vmatprep.subr.bf16.mxu1 %v1832_v4 }
  0x85   :  { %1216 = vmatpush1.bf16.msra.mxu1 %v1760_v47 }
  0x86   :  { %1217 = vmatprep.subr.bf16.mxu1 %v1832_v4 }
  0x89   :  { %1218 = vmatpush1.bf16.msra.mxu1 %v1763_v48 }
  0x8a   :  { %1219 = vmatprep.subr.bf16.mxu1 %v1832_v4 }
  0x8d   :  { %1220 = vmatpush1.bf16.msra.mxu1 %v1766_v49 }
  0x8e   :  { %1221 = vmatprep.subr.bf16.mxu1 %v1832_v4 }
  0x91   :  { %1222 = vmatpush1.bf16.msra.mxu1 %v1769_v50 }
  0x92   :  { %1223 = vmatprep.subr.bf16.mxu1 %v1832_v4 }
  0x95   :  { %1224 = vmatpush1.bf16.msra.mxu1 %v1772_v51 }
  0x96   :  { %1225 = vmatprep.subr.bf16.mxu1 %v1832_v4 }
  0x97   :  { %v74_v1 = vpop.permute.xlu0 %73 }
  0x98   :  { %v80_v2 = vmul.f32 %v79_v63, %v74_v1 }
  0x99   :  { %1226 = vmatpush1.bf16.msra.mxu1 %v1775_v52 }
  0x9a   :  { %v85_v3 = vadd.f32 %v84_v0, %v80_v2  ;;  %1227 = vmatprep.subr.bf16.mxu1 %v1832_v4  ;;  %v69_v0 = vrot.slane %v1959_v62, %v63_v60  ;;  %v1402_v62 = vcombine.high %v345_v7, %v345_v7  ;;  %v1833_v60 = vmov 0.0|0.0   ;;  %v1267_v7 = vld [vmem:[%s2063_s6 + $0x38] sm:$0xff] }
  0x9c   :  { %v86_v6 = vmax.f32 %v85_v3, 0.0 }
  0x9d   :  { %1228 = vmatpush1.bf16.msra.mxu1 %v1049_v54 }
  0x9e   :  { %327 = vrot.lane.b32.xlu1 %v86_v6, %s1828_s1 }
  0xa0   :  { %1244 = vmatmul.mubr.bf16.vlgmr.msra.gmra.mrb[8].mxu1 %v1407_v59  ;;  %v1261_v59 = vld [vmem:[%s2063_s6 + $0x8] sm:$0xff] }
  0xe7   :  { %v194_v22 = vpop.permute.xlu0 %193  ;;  %v313_v23 = vpop.permute.xlu1 %312 }
  0xe8   :  { %v200_v24 = vmul.f32 %v199_v16, %v194_v22  ;;  %v319_v25 = vmul.f32 %v318_v17, %v313_v23  ;;  %v1729_v16 = vld [vmem:[#allocation3 + $0x90] sm:$0xff]   ;;  %v1732_v17 = vld [vmem:[#allocation3 + $0xd8] sm:$0xff]   ;;  %v1741_v22 = vld [vmem:[#allocation3 + $0xa8] sm:$0xff]  }
  0xe9   :  { %v1744_v23 = vld [vmem:[#allocation3 + $0xf0] sm:$0xff]  }
  0xea   :  { %v205_v27 = vadd.f32 %v204_v19, %v200_v24  ;;  %v324_v5 = vadd.f32 %v323_v20, %v319_v25  ;;  %v1736_v19 = vld [vmem:[#allocation3 + $0xe0] sm:$0xff]   ;;  %v1745_v24 = vld [vmem:[#allocation3 + $0xb0] sm:$0xff]   ;;  %v1748_v25 = vld [vmem:[#allocation3 + $0xf8] sm:$0xff]  }
  0xeb   :  { %v1737_v20 = vld [vmem:[#allocation3 + $0xa0] sm:$0xff]  }
  0xec   :  { %v206_v29 = vmax.f32 %v205_v27, 0.0  ;;  %v325_v30 = vmax.f32 %v324_v5, 0.0  ;;  %v59_v63 = vpop.permute.xlu1 %58  ;;  %v1755_v27 = vld [vmem:[#allocation3 + $0x1c0] sm:$0xff]   ;;  %v347_v5 = vld [vmem:[%s2057_s0 + $0x18] sm:$0xff] }
  0xed   :  { %v65_v1 = vmul.f32 %v64_v61, %v59_v63  ;;  %v1405_v4 = vcombine.low %v347_v5, %v347_v5  ;;  %v1646_v61 = vpack.c.bf16 %v1261_v59, %v1260_v58  ;;  %v1263_v63 = vld [vmem:[%s2063_s6 + $0x18] sm:$0xff] }
  0xee   :  { %331 = vrot.lane.b32.xlu0 %v206_v29, %s1830_s4  ;;  %335 = vrot.lane.b32.xlu1 %v325_v30, %s1831_s22  ;;  %v1756_v29 = vld [vmem:[#allocation3 + $0x180] sm:$0xff]   ;;  %v1406_v30 = vcombine.high %v347_v5, %v347_v5 }
  0xef   :  { %v70_v2 = vadd.f32 %v69_v0, %v65_v1  ;;  %v1264_v1 = vld [vmem:[%s2063_s6 + $0x20] sm:$0xff] }
  0xf1   :  { %v71_v3 = vmax.f32 %v70_v2, 0.0  ;;  %v1265_v2 = vld [vmem:[%s2063_s6 + $0x28] sm:$0xff] }
 0x110   :  { %v328_v6 = vpop.permute.xlu1 %327 }
 0x111   :  { %v339_v8 = vsel %vm338_vm3, %v71_v3, %v328_v6  ;;  %v1652_v3 = vpack.c.bf16 %v1265_v2, %v1264_v1  ;;  %v1266_v6 = vld [vmem:[%s2063_s6 + $0x30] sm:$0xff] }
 0x122   :  { %v1509_v46 = vpop.f32.mrb[0].mxu1 }
 0x123   :  { %v1510_v47 = vpop.f32.mrb[1].mxu1 }
 0x124   :  { %v1511_v48 = vadd.f32 %v1510_v47, %v1509_v46  ;;  %v1512_v49 = vpop.f32.mrb[2].mxu1  ;;  %v1485_v47 = vld [vmem:[%s2065_s8] ss:$0 sm:$0xff] }
 0x125   :  { %v1513_v50 = vpop.f32.mrb[3].mxu1 }
 0x14f   :  { %v1553_v51 = vpop.f32.mrb[4].mxu1 }
 0x150   :  { %v1554_v52 = vpop.f32.mrb[5].mxu1 }
 0x151   :  { %v1555_v53 = vadd.f32 %v1554_v52, %v1553_v51  ;;  %v1556_v54 = vpop.f32.mrb[6].mxu1  ;;  %v1486_v51 = vld [vmem:[#allocation2] ss:$0 sm:$0xff] }
 0x152   :  { %v1557_v55 = vpop.f32.mrb[7].mxu1 }
 0x160   :  { %v332_v9 = vpop.permute.xlu0 %331  ;;  %v336_v10 = vpop.permute.xlu1 %335 }
 0x161   :  { %v341_v56 = vsel %vm340_vm4, %v339_v8, %v332_v9  ;;  %v1655_v8 = vpack.c.bf16 %v1267_v7, %v1266_v6  ;;  %v1268_v9 = vld [vmem:[%s2063_s6 + $0x40] sm:$0xff] }
 0x162   :  { %v343_v57 = vsel %vm342_vm5, %v341_v56, %v336_v10  ;;  %v1269_v10 = vld [vmem:[%s2063_s6 + $0x48] sm:$0xff] }
 0x163   :  { %v495_v12 = vpack.c.bf16 %v343_v57, %v343_v57  ;;  %v1658_v56 = vpack.c.bf16 %v1269_v10, %v1268_v9  ;;  %v1270_v57 = vld [vmem:[%s2063_s6 + $0x50] sm:$0xff] }
 0x165   :  { %1607 = vmatmul.mubr.msk.bf16.vlgmr.msra.gmra.mrb[0].mxu0 %vm528_vm6, %v495_v12  ;;  %v1272_v12 = vld [vmem:[%s2063_s6 + $0x60] sm:$0xff] }
 0x166   :  { %1516 = vmatpush3.bf16.msra.mxu0 %v1721_v11  ;;  %1123 = vmatprep.mubr.bf16.mxu0 %v1402_v62  ;;  %v1271_v11 = vld [vmem:[%s2063_s6 + $0x58] sm:$0xff] }
 0x167   :  { %1517 = vmatprep.subr.bf16.mxu0 %v1724_v13  ;;  %v1661_v62 = vpack.c.bf16 %v1271_v11, %v1270_v57  ;;  %v1273_v13 = vld [vmem:[%s2063_s6 + $0x68] sm:$0xff] }
 0x16a   :  { %1518 = vmatpush3.bf16.msra.mxu0 %v1725_v14 }
 0x16b   :  { %1519 = vmatprep.subr.bf16.mxu0 %v1728_v15  ;;  %v1664_v15 = vpack.c.bf16 %v1273_v13, %v1272_v12 }
 0x16e   :  { %1520 = vmatpush3.bf16.msra.mxu0 %v1729_v16 }
 0x16f   :  { %1521 = vmatprep.subr.bf16.mxu0 %v1732_v17 }
 0x172   :  { %1522 = vmatpush3.bf16.msra.mxu0 %v1733_v18 }
 0x173   :  { %1523 = vmatprep.subr.bf16.mxu0 %v1736_v19  ;;  %v1245_v14 = vpop.f32.mrb[8].mxu1  ;;  %v1274_v19 = vld [vmem:[%s2063_s6 + $0x70] sm:$0xff] }
 0x174   :  { %v1247_v16 = vpop.f32.mrb[9].mxu1 }
 0x175   :  { %v1248_v17 = vpop.f32.mrb[10].mxu1 }
 0x176   :  { %1524 = vmatpush3.bf16.msra.mxu0 %v1737_v20  ;;  %v1249_v18 = vpop.f32.mrb[11].mxu1  ;;  %v1275_v20 = vld [vmem:[%s2063_s6 + $0x78] sm:$0xff] }
 0x177   :  { %1525 = vmatprep.subr.bf16.mxu0 %v1740_v21  ;;  %v1667_v21 = vpack.c.bf16 %v1275_v20, %v1274_v19 }
 0x17a   :  { %1526 = vmatpush3.bf16.msra.mxu0 %v1741_v22 }
 0x17b   :  { %1527 = vmatprep.subr.bf16.mxu0 %v1744_v23 }
 0x17e   :  { %1528 = vmatpush3.bf16.msra.mxu0 %v1745_v24 }
 0x17f   :  { %1529 = vmatprep.subr.bf16.mxu0 %v1748_v25 }
 0x182   :  { %1530 = vmatpush3.bf16.msra.mxu0 %v1749_v26 }
 0x183   :  { %1559 = vmatprep.subr.bf16.mxu0 %v1755_v27 }
 0x185   :  { %1124 = vmatmul.mubr.bf16.vlgmr.msra.gmra.mrb[4].mxu0 %v1401_v28 }
 0x186   :  { %1560 = vmatpush3.bf16.msra.mxu0 %v1756_v29  ;;  %1203 = vmatprep.mubr.bf16.mxu0 %v1406_v30 }
 0x187   :  { %1561 = vmatprep.subr.bf16.mxu0 %v1758_v31 }
 0x18a   :  { %1562 = vmatpush3.bf16.msra.mxu0 %v1759_v32 }
 0x18b   :  { %1563 = vmatprep.subr.bf16.mxu0 %v1761_v33 }
 0x18e   :  { %1564 = vmatpush3.bf16.msra.mxu0 %v1762_v34 }
 0x18f   :  { %1565 = vmatprep.subr.bf16.mxu0 %v1764_v35 }
 0x192   :  { %1566 = vmatpush3.bf16.msra.mxu0 %v1765_v36 }
 0x193   :  { %1567 = vmatprep.subr.bf16.mxu0 %v1767_v37 }
 0x196   :  { %1568 = vmatpush3.bf16.msra.mxu0 %v1768_v38 }
 0x197   :  { %1569 = vmatprep.subr.bf16.mxu0 %v1770_v39  ;;  %v1483_v39 = vld [vmem:[%s2062_s5] ss:$0 sm:$0xff] }
 0x19a   :  { %1570 = vmatpush3.bf16.msra.mxu0 %v1771_v40 }
 0x19b   :  { %1571 = vmatprep.subr.bf16.mxu0 %v1773_v41 }
 0x19e   :  { %1572 = vmatpush3.bf16.msra.mxu0 %v1774_v43 }
 0x19f   :  { %1573 = vmatprep.subr.bf16.mxu0 %v1776_v44  ;;  %v1484_v44 = vld [vmem:[%s2064_s7] ss:$0 sm:$0xff] }
 0x1a2   :  { %1574 = vmatpush3.bf16.msra.mxu0 %v1777_v45 }
 0x1a3   :  { %1645 = vmatprep.subr.bf16.mxu0 %v1833_v60 }
 0x1a5   :  { %1204 = vmatmul.mubr.bf16.vlgmr.msra.gmra.mrb[8].mxu0 %v1405_v4 }
 0x1a6   :  { %1642 = vmatprep.mubr.msk.f32.mxu0 %vm1829_vm0, %v1827_v42  ;;  %v1262_v42 = vld [vmem:[%s2063_s6 + $0x10] sm:$0xff]  ;;  %1647 = vmatpush3.bf16.msra.mxu0 %v1646_v61 }
 0x1a7   :  { %v1649_v0 = vpack.c.bf16 %v1263_v63, %v1262_v42  ;;  %1648 = vmatprep.subr.bf16.mxu0 %v1833_v60 }
 0x1aa   :  { %1650 = vmatpush3.bf16.msra.mxu0 %v1649_v0 }
 0x1ab   :  { %1651 = vmatprep.subr.bf16.mxu0 %v1833_v60 }
 0x1ae   :  { %1653 = vmatpush3.bf16.msra.mxu0 %v1652_v3 }
 0x1af   :  { %1654 = vmatprep.subr.bf16.mxu0 %v1833_v60 }
 0x1b2   :  { %1656 = vmatpush3.bf16.msra.mxu0 %v1655_v8 }
 0x1b3   :  { %1657 = vmatprep.subr.bf16.mxu0 %v1833_v60 }
 0x1b6   :  { %1659 = vmatpush3.bf16.msra.mxu0 %v1658_v56 }
 0x1b7   :  { %1660 = vmatprep.subr.bf16.mxu0 %v1833_v60 }
 0x1ba   :  { %1662 = vmatpush3.bf16.msra.mxu0 %v1661_v62 }
 0x1bb   :  { %1663 = vmatprep.subr.bf16.mxu0 %v1833_v60 }
 0x1be   :  { %1665 = vmatpush3.bf16.msra.mxu0 %v1664_v15 }
 0x1bf   :  { %1666 = vmatprep.subr.bf16.mxu0 %v1833_v60 }
 0x1c2   :  { %1668 = vmatpush3.bf16.msra.mxu0 %v1667_v21 }
 0x238   :  { %v566_v22 = vpop.f32.mrb[0].mxu0 }
 0x239   :  { %v1086_v23 = vadd.f32 %v1511_v48, %v566_v22  ;;  %v1608_v24 = vpop.f32.mrb[1].mxu0 }
 0x23a   :  { %v569_v25 = vpop.f32.mrb[2].mxu0 }
 0x23b   :  { %v1609_v26 = vpop.f32.mrb[3].mxu0 }
 0x258   :  { %v1531_v27 = vpop.f32.mrb[4].mxu0 }
 0x259   :  { %v1532_v5 = vpop.f32.mrb[5].mxu0 }
 0x25a   :  { %v1533_v28 = vadd.f32 %v1532_v5, %v1531_v27  ;;  %v1534_v29 = vpop.f32.mrb[6].mxu0 }
 0x25b   :  { %v1535_v30 = vpop.f32.mrb[7].mxu0 }
 0x25c   :  { %v1126_v31 = vadd.f32 %v1533_v28, %v1086_v23 }
 0x25e   :  { %v1166_v32 = vadd.f32 %v1555_v53, %v1126_v31 }
 0x278   :  { %v1575_v33 = vpop.f32.mrb[8].mxu0 }
 0x279   :  { %v1576_v34 = vpop.f32.mrb[9].mxu0 }
 0x27a   :  { %v1577_v35 = vadd.f32 %v1576_v34, %v1575_v33  ;;  %v1578_v36 = vpop.f32.mrb[10].mxu0 }
 0x27b   :  { %v1579_v37 = vpop.f32.mrb[11].mxu0 }
 0x27c   :  { %v1206_v38 = vadd.f32 %v1577_v35, %v1166_v32 }
 0x27e   :  { %v1246_v40 = vadd.f32 %v1245_v14, %v1206_v38 }
 0x280   :  { %v1258_v41 = vadd.f32 %v1483_v39, %v1246_v40 }
 0x282   :  { %v1259_v43 = vmax.f32 %v1258_v41, 0.0 }
 0x284   :  { %1643 = vmatmul.mubr.f32.vlgmr.msra.gmra.mrb[12].mxu0 %v1259_v43 }
 0x357   :  { %v1349_v45 = vpop.f32.mrb[12].mxu0 }
 0x358   :  { %v1350_v4 = vadd.f32 %v1484_v44, %v1349_v45  ;;  %v1644_v46 = vpop.f32.mrb[13].mxu0 }
 0x35a   :  { %v1353_v48 = vmax.f32 %v1350_v4, 0.0 }
 0x35c   :  { %v1361_v49 = vmul.f32 %v1485_v47, %v1353_v48 }
 0x35e   :  { %v1362_v50 = vsel %vm340_vm4, %v1361_v49, 0.0 }
 0x35f   :  { %1363 = vadd.xlane.f32.xlu0 %v1362_v50 }
 0x3ec   :  { %v1364_v52 = vpop.xlane.xlu0 %1363 }
 0x3ed   :  { %v1372_v53 = vadd.f32 %v1486_v51, %v1364_v52 }
 0x3ef   :  { %v1487_v54 = vmul.f32 -1.442695, %v1372_v53 }
 0x3f1   :  { %1787 = vpow2.f32 %v1487_v54 }
 0x3fb   :  { %v1788_v55 = vpop.eup %1787 }
 0x3fc   :  { %v1376_v58 = vadd.f32 1.0, %v1788_v55 }
 0x3fe   :  { %1789 = vrcp.f32 %v1376_v58 }
 0x408   :  { %v1790_v59 = vpop.eup %1789 }
 0x409   :  { %1380 = vst.msk [vmem:[%s2067_s10] sm:$0xff] %vm1379_vm7, %v1790_v59 }
 0x40a   :  { %1385 = vsyncpa [#allocation4], 1 }

</bundles_post_ra>
